<compile_context>
chip_gen: v5e
topology: v5e:2x2
jax: 0.10.0
libtpu: 0.0.40
codegen_flags: <defaults>
</compile_context>

<pallas_src>
import jax
import jax.numpy as jnp
from jax import lax
from jax.experimental import pallas as pl
from jax.experimental.pallas import tpu as pltpu


# ---------------------------------------------------------------------------
# Kernels
# ---------------------------------------------------------------------------

def _deform_kernel_small(x_ref, w_ref, b_ref, o_ref):
    # x_ref: (B, C), w_ref: (O, C) [PyTorch layout], b_ref: (1, O), o_ref: (B, O)
    acc = lax.dot_general(
        x_ref[...], w_ref[...],
        dimension_numbers=(((1,), (1,)), ((), ())),      # contract on C
        preferred_element_type=jnp.float32)              # (B, O)
    acc = acc + b_ref[...]                               # broadcast (1, O)
    o_ref[...] = (jnp.tanh(acc) * 0.9).astype(o_ref.dtype)


def _deform_kernel_tiled(x_ref, w_ref, b_ref, o_ref):
    # x_ref: (TB, C), w_ref: (O, C), b_ref: (O, 1), o_ref: (O, TB)  (lane-dense)
    # Rows of the last (ragged) block past B are undefined; they only feed
    # output columns >= B, which Pallas masks on store.  Do NOT reduce across
    # the TB axis here.
    acc = lax.dot_general(
        w_ref[...], x_ref[...],
        dimension_numbers=(((1,), (1,)), ((), ())),      # contract on C
        preferred_element_type=jnp.float32)              # (O, TB)
    acc = acc + b_ref[...]                               # broadcast (O, 1)
    o_ref[...] = (jnp.tanh(acc) * 0.9).astype(o_ref.dtype)


# ---------------------------------------------------------------------------
# Wrapper
# ---------------------------------------------------------------------------

_GRIDLESS_MAX_B = 16384   # whole-array-in-VMEM path for B <= this
_TILE_B = 8192            # rows per grid step on the tiled path (mult. of 128)


def _cost(B, C, O, extra_out_pass=False):
    out_passes = 2 if extra_out_pass else 1   # account for unfused transpose
    return pl.CostEstimate(
        flops=2 * B * C * O,
        transcendentals=B * O,
        bytes_accessed=4 * (B * C + C * O + O + out_passes * B * O),
    )


def deform_nn_forward(lt, weight, bias, n_primitives):
    """lt: (B, C) float32; weight: (O, C) (PyTorch layout); bias: (O,)."""
    B, C = lt.shape
    O = weight.shape[0]
    assert O == n_primitives * 2

    if B <= _GRIDLESS_MAX_B:
        # Small/medium batch: gridless call, whole operands resident in VMEM.
        # No pipeline setup, no lane-dense transpose in the wrapper.
        out = pl.pallas_call(
            _deform_kernel_small,
            out_shape=jax.ShapeDtypeStruct((B, O), lt.dtype),
            in_specs=[
                pl.BlockSpec(memory_space=pltpu.MemorySpace.VMEM),  # lt
                pl.BlockSpec(memory_space=pltpu.MemorySpace.VMEM),  # weight (O, C)
                pl.BlockSpec(memory_space=pltpu.MemorySpace.VMEM),  # bias (1, O)
            ],
            out_specs=pl.BlockSpec(memory_space=pltpu.MemorySpace.VMEM),
            compiler_params=pltpu.CompilerParams(
                vmem_limit_bytes=32 << 20),
            cost_estimate=_cost(B, C, O),
        )(lt, weight, bias.reshape(1, O))
        return out.reshape(-1, n_primitives, 2)

    # Large batch: tile rows over a parallel grid axis (shards across both
    # TensorCores on v7x).  No padding of the input: the ragged last block is
    # handled by Pallas's OOB-read / masked-write semantics.  Output is
    # produced lane-dense as (O, TB) blocks (unmasked vst); the cheap
    # transpose / reshape is done in the wrapper.
    out_t = pl.pallas_call(
        _deform_kernel_tiled,
        out_shape=jax.ShapeDtypeStruct((O, B), lt.dtype),
        grid=(pl.cdiv(B, _TILE_B),),
        in_specs=[
            pl.BlockSpec((_TILE_B, C), lambda i: (i, 0)),   # lt tile
            pl.BlockSpec((O, C), lambda i: (0, 0)),         # weight (whole)
            pl.BlockSpec((O, 1), lambda i: (0, 0)),         # bias   (whole)
        ],
        out_specs=pl.BlockSpec((O, _TILE_B), lambda i: (0, i)),
        compiler_params=pltpu.CompilerParams(
            dimension_semantics=("parallel",)),
        cost_estimate=_cost(B, C, O, extra_out_pass=True),
    )(lt, weight, bias.reshape(O, 1))

    out = out_t.T                                           # (B, O)
    return out.reshape(-1, n_primitives, 2)


# ---------------------------------------------------------------------------
# Self-test
# ---------------------------------------------------------------------------

if __name__ == "__main__":
    input_channels = 32
    n_primitives = 4
    out_features = n_primitives * 2

    key = jax.random.PRNGKey(0)
    k_x, k_w, k_b, k_x2, k_x3 = jax.random.split(key, 5)

    # Deterministic synthetic parameters (PyTorch Linear-like uniform init).
    bound = 1.0 / jnp.sqrt(input_channels)
    weight = jax.random.uniform(
        k_w, (out_features, input_channels), minval=-bound, maxval=bound,
        dtype=jnp.float32)
    bias = jax.random.uniform(
        k_b, (out_features,), minval=-bound, maxval=bound, dtype=jnp.float32)

    def ref_fn(x):
        return (jnp.tanh(x @ weight.T + bias) * 0.9).reshape(
            -1, n_primitives, 2)

    # 1) Small batch (gridless path), batch=2.
    lt = jax.random.normal(k_x, (2, input_channels), dtype=jnp.float32)
    taperings = jax.block_until_ready(
        deform_nn_forward(lt, weight, bias, n_primitives))
    assert taperings.shape == (2, n_primitives, 2)
    assert jnp.allclose(taperings, ref_fn(lt), atol=1e-5, rtol=1e-5)

    # 2) Medium batch, not a multiple of 8 (still gridless path).
    lt_med = jax.random.normal(k_x2, (300, input_channels), dtype=jnp.float32)
    taperings_med = jax.block_until_ready(
        deform_nn_forward(lt_med, weight, bias, n_primitives))
    assert taperings_med.shape == (300, n_primitives, 2)
    assert jnp.allclose(taperings_med, ref_fn(lt_med), atol=1e-5, rtol=1e-5)

    # 3) Large batch, ragged last block (tiled, lane-dense, parallel-grid path).
    big_batch = _GRIDLESS_MAX_B + 777
    lt_big = jax.random.normal(
        k_x3, (big_batch, input_channels), dtype=jnp.float32)
    taperings_big = jax.block_until_ready(
        deform_nn_forward(lt_big, weight, bias, n_primitives))
    assert taperings_big.shape == (big_batch, n_primitives, 2)
    assert jnp.allclose(taperings_big, ref_fn(lt_big), atol=1e-5, rtol=1e-5)

    print("KERNEL_OK")
</pallas_src>

<mosaic_0001>
module attributes {stable_mosaic.version = 11 : i64} {
  func.func @_deform_kernel_small(%arg0: memref<2x32xf32, #tpu.memory_space<vmem>>, %arg1: memref<8x32xf32, #tpu.memory_space<vmem>>, %arg2: memref<1x8xf32, #tpu.memory_space<vmem>>, %arg3: memref<2x8xf32, #tpu.memory_space<vmem>>) attributes {dimension_semantics = [], scalar_prefetch = 0 : i64, scratch_operands = 0 : i64, tpu.core_type = #tpu.core_type<tc>} {
    %c0 = arith.constant 0 : index
    %c0_0 = arith.constant 0 : index
    %0 = vector.load %arg0[%c0, %c0_0] : memref<2x32xf32, #tpu.memory_space<vmem>>, vector<2x32xf32>
    %c0_1 = arith.constant 0 : index
    %c0_2 = arith.constant 0 : index
    %1 = vector.load %arg1[%c0_1, %c0_2] : memref<8x32xf32, #tpu.memory_space<vmem>>, vector<8x32xf32>
    %cst = arith.constant dense<0.000000e+00> : vector<2x8xf32>
    %2 = tpu.matmul %0, %1, %cst {dimension_numbers = #tpu.dot_dimension_numbers<[1], [1], [0], [0], [0, 0, 1, 0], [], []>} : vector<2x32xf32>, vector<8x32xf32>, vector<2x8xf32> -> vector<2x8xf32>
    %c0_3 = arith.constant 0 : index
    %c0_4 = arith.constant 0 : index
    %3 = vector.load %arg2[%c0_3, %c0_4] : memref<1x8xf32, #tpu.memory_space<vmem>>, vector<1x8xf32>
    %4 = vector.broadcast %3 : vector<1x8xf32> to vector<2x8xf32>
    %5 = arith.addf %2, %4 : vector<2x8xf32>
    %6 = math.tanh %5 : vector<2x8xf32>
    %cst_5 = arith.constant 0.899999976 : f32
    %7 = vector.broadcast %cst_5 : f32 to vector<2x8xf32>
    %8 = arith.mulf %6, %7 : vector<2x8xf32>
    %c0_6 = arith.constant 0 : index
    %c0_7 = arith.constant 0 : index
    %9 = vector.load %arg3[%c0_6, %c0_7] : memref<2x8xf32, #tpu.memory_space<vmem>>, vector<2x8xf32>
    tpu.vector_store %arg3[%c0_6, %c0_7], %8 {strides = array<i32>} : memref<2x8xf32, #tpu.memory_space<vmem>>, vector<2x8xf32>,
    return
  }
}

</mosaic_0001>

<bundles_post_ra>
// kernel: tpu_custom_call.1
= control target key start
LH: loop header
LB: loop body
LE: loop exit
PB: predicated region body
PF: predicated region fallthrough
CT: control target
= control target key end

     0   :  { %8 = vsyncpa [#allocation3], 0  ;;  %s219_s0 = inlined_call_operand.hbm [shape: f32[2,32], index: 0, kind: input, shape index: {}]   ;;  %s220_s1 = inlined_call_operand.hbm [shape: f32[8,32], index: 1, kind: input, shape index: {}]   ;;  %s221_s2 = inlined_call_operand.vmem [shape: f32[1,8], index: 2, kind: input, shape index: {}]   ;;  %s222_s3 = inlined_call_operand.hbm [shape: f32[2,8], index: 3, kind: output, shape index: {}]  }
   0x1   :  { %9 = vsyncpa [#allocation6], 0 }
   0x2   :  { %10 = vsyncpa [#allocation4], 0  ;;  %s16_s14 = sshll.u32 %s219_s0, 4  ;;  %s184_s15 = smov [#allocation2]   ;;  %s17_s14 = int_to_ptr.hbm [resolvable:$true] %s16_s14 }
   0x3   :  { %s18_s16 = sshll.u32 %s184_s15, 4  ;;  %s27_s19 = sshll.u32 %s220_s1, 4  ;;  %s19_s16 = int_to_ptr.vmem [resolvable:$true] %s18_s16  ;;  %s28_s19 = int_to_ptr.hbm [resolvable:$true] %s27_s19 }
   0x4   :  { %21 = dma.hbm_to_vmem [thread:$0]  %s17_s14, 32, %s19_s16, [#allocation3]  }
   0x5   :  { %s185_s20 = smov [#allocation5]  }
   0x6   :  { %s29_s21 = sshll.u32 %s185_s20, 4  ;;  %s30_s21 = int_to_ptr.vmem [resolvable:$true] %s29_s21 }
   0x7   :  { %32 = dma.hbm_to_vmem [thread:$0]  %s28_s19, 128, %s30_s21, [#allocation6]  }
   0x8   :  { %178 = dma.done.wait [#allocation3], 32  }
   0x9   :  { %179 = vsyncadd [#allocation3], 4294967264 }
   0xa   :  { %180 = dma.done.wait [#allocation6], 128  }
   0xb   :  { %181 = vsyncadd [#allocation6], 4294967168  ;;  %vm49_vm0 = vcmask 261120   ;;  %v44_v0 = vld [vmem:[#allocation5] sm:$0xff]  ;;  %v43_v1 = vld [vmem:[#allocation2] sm:$0x3] }
   0xc   :  { %98 = vmatpush.xpose.msk.msra.mxu0 %vm49_vm0, %v44_v0  ;;  %v103_v2 = vld [vmem:[%s221_s2] ss:$0 sm:$0xff]  ;;  %s186_s1 = smov [#allocation7]   ;;  %s87_s26 = sshll.u32 %s222_s3, 4  ;;  %vm78_vm1 = vcmask 58368   ;;  %s88_s26 = int_to_ptr.hbm [resolvable:$true] %s87_s26 }
   0xd   :  { %s85_s23 = sshll.u32 %s186_s1, 4  ;;  %s86_s23 = int_to_ptr.vmem [resolvable:$true] %s85_s23 }
   0xf   :  { %99 = vmatmul.msk.f32.vlgmr.msra.gmra.mxu0 %vm49_vm0, %v43_v1 }
  0x8c   :  { %v73_v3 = vpop.f32.mrf.mxu0 }
  0x8d   :  { %v74_v4 = vadd.f32 %v103_v2, %v73_v3 }
  0x8f   :  { %104 = vtanh.f32 %v74_v4 }
  0x95   :  { %v105_v5 = vpop.eup %104 }
  0x96   :  { %v77_v6 = vmul.f32 0.9, %v105_v5 }
  0x98   :  { %79 = vst.msk [vmem:[#allocation7] sm:$0x3] %vm78_vm1, %v77_v6 }
  0x99   :  { %90 = dma.vmem_to_hbm [thread:$0]  %s86_s23, 32, %s88_s26, [#allocation4]  }
  0x9a   :  { %182 = dma.done.wait [#allocation4], 32  }
  0x9b   :  { %183 = vsyncadd [#allocation4], 4294967264 }
  0x9c   :  { %95 = vsyncpa [#allocation3], 1 }
  0x9d   :  { %96 = vsyncpa [#allocation6], 1 }
  0x9e   :  { %97 = vsyncpa [#allocation4], 1 }

</bundles_post_ra>
